<compile_context>
chip_gen: v7x
topology: tpu7x:2x2x1
jax: 0.10.0
libtpu: 0.0.40
codegen_flags: <defaults>
</compile_context>

<pallas_src>
import functools

import jax
import jax.numpy as jnp
from jax import lax
from jax.experimental import pallas as pl
from jax.experimental.pallas import tpu as pltpu

_SUB = 256  # batch rows (lanes) processed per inner-loop iteration


def _linear_relu(h, w_ref, b_ref):
    # MXU in bf16 (W is (out, in), H is (in, n)); accumulate in f32; bias + ReLU on the VPU in f32.
    y = jnp.dot(w_ref[...], h.astype(w_ref.dtype),
                preferred_element_type=jnp.float32) + b_ref[...]
    return jnp.maximum(y, 0.0)


def pnet_kernel(x_ref,
                w1, b1, w2, b2, w21, b21, w211, b211,
                w212, b212, w22, b22, w3, b3,
                o_ref):
    tb = x_ref.shape[1]            # batch rows in this grid step (lane axis); multiple of _SUB
    n_sub = tb // _SUB

    def body(s, carry):
        c0 = pl.multiple_of(s * _SUB, _SUB)
        h = x_ref[:, pl.ds(c0, _SUB)]        # (3, 256) f32
        h = _linear_relu(h, w1, b1)          # fc1     : 3  -> 8
        h = _linear_relu(h, w2, b2)          # fc2     : 8  -> 32
        h = _linear_relu(h, w21, b21)        # fc2_1   : 32 -> 64
        h = _linear_relu(h, w211, b211)      # fc2_1_1 : 64 -> 64
        # dropout (eval mode): identity
        h = _linear_relu(h, w212, b212)      # fc2_1_2 : 64 -> 32
        h = _linear_relu(h, w22, b22)        # fc2_2   : 32 -> 16
        # dropout (eval mode): identity
        out = jnp.dot(w3[...], h.astype(w3.dtype),
                      preferred_element_type=jnp.float32) + b3[...]   # fc3: 16 -> 4
        o_ref[:, pl.ds(c0, _SUB)] = out.astype(o_ref.dtype)           # lane-dense store
        return carry

    # Unroll so MXU / VPU / store work of adjacent sub-chunks can be interleaved by the scheduler.
    lax.fori_loop(0, n_sub, body, None, unroll=min(n_sub, 8))


def _round_up(n, m):
    return ((n + m - 1) // m) * m


@functools.partial(jax.jit, static_argnames=("block_b",))
def pnet_forward(x, *params, block_b=8192):
    """Forward pass of P_Net. params = [w1, b1, ..., w3, b3]; w_i: (in, out), b_i: (1, out)."""
    B = x.shape[0]
    x2d = x.reshape(B, -1).astype(jnp.float32)            # x.view(x.size(0), -1)
    in_dim = x2d.shape[1]
    out_dim = params[-1].shape[-1]

    # Lane-dense layout: batch on the lane axis -> kernel sees x as (in_dim, b_pad).
    # Always emit >=2 grid steps (v7x has 2 TensorCores) and size the tile from B so
    # padding stays below _SUB rows per grid step.
    n_steps = max(2, pl.cdiv(B, block_b))
    tb = _round_up(pl.cdiv(B, n_steps), _SUB)
    b_pad = n_steps * tb

    xT = x2d.T                                             # (in_dim, B)
    if b_pad != B:
        xT = jnp.pad(xT, ((0, 0), (0, b_pad - B)))

    # bf16 MXU operands, weights transposed to (out, in); biases stay f32 as (out, 1).
    kparams = []
    for w, b in zip(params[0::2], params[1::2]):
        kparams.append(w.T.astype(jnp.bfloat16))
        kparams.append(b.reshape(-1, 1).astype(jnp.float32))

    grid = (n_steps,)
    x_spec = pl.BlockSpec((in_dim, tb), lambda i: (0, i))
    out_spec = pl.BlockSpec((out_dim, tb), lambda i: (0, i))
    # Constant index_map -> weights/biases stay resident in VMEM across grid steps.
    param_specs = [pl.BlockSpec(p.shape, lambda i: (0, 0)) for p in kparams]

    flops = b_pad * sum(2 * w.shape[0] * w.shape[1] for w in kparams[0::2])
    bytes_accessed = (b_pad * (in_dim + out_dim) * 4
                      + sum(int(p.size) * p.dtype.itemsize for p in kparams))

    outT = pl.pallas_call(
        pnet_kernel,
        out_shape=jax.ShapeDtypeStruct((out_dim, b_pad), jnp.float32),
        grid=grid,
        in_specs=[x_spec] + param_specs,
        out_specs=out_spec,
        compiler_params=pltpu.CompilerParams(
            dimension_semantics=("parallel",)),
        cost_estimate=pl.CostEstimate(
            flops=flops, transcendentals=0, bytes_accessed=bytes_accessed),
    )(xT, *kparams)

    # Back to row-major (B, out_dim), dropping batch padding.  The trailing
    # x.view(x.size(0), -1) in the module is a no-op for a 2-D tensor.
    return outT[:, :B].T


def init_linear_params(key, in_dim, out_dim):
    """PyTorch-style nn.Linear init: U(-1/sqrt(in), 1/sqrt(in)); weight stored as (in, out)."""
    kw, kb = jax.random.split(key)
    bound = 1.0 / jnp.sqrt(jnp.float32(in_dim))
    w = jax.random.uniform(kw, (in_dim, out_dim), jnp.float32, -bound, bound)
    b = jax.random.uniform(kb, (1, out_dim), jnp.float32, -bound, bound)
    return w, b


def make_pnet_params(key, input_size=3, hidden_size1=8, hidden_size2=16, output_size=4):
    dims = [
        (input_size, hidden_size1),            # fc1
        (hidden_size1, hidden_size2 * 2),      # fc2
        (hidden_size2 * 2, hidden_size2 * 4),  # fc2_1
        (hidden_size2 * 4, hidden_size2 * 4),  # fc2_1_1
        (hidden_size2 * 4, hidden_size2 * 2),  # fc2_1_2
        (hidden_size2 * 2, hidden_size2),      # fc2_2
        (hidden_size2, output_size),           # fc3
    ]
    keys = jax.random.split(key, len(dims))
    params = []
    for k, (din, dout) in zip(keys, dims):
        params.extend(init_linear_params(k, din, dout))
    return params  # [w1, b1, w2, b2, ..., w3, b3]


def pnet_reference(x, *params):
    """Pure-JAX reference mirroring the kernel's bf16-MXU / f32-accumulate semantics."""
    B = x.shape[0]
    h = x.reshape(B, -1).astype(jnp.float32)
    ws = [w.astype(jnp.bfloat16) for w in params[0::2]]
    bs = [b.astype(jnp.float32) for b in params[1::2]]

    def lin(h, w, b):
        return jnp.dot(h.astype(jnp.bfloat16), w,
                       preferred_element_type=jnp.float32) + b

    for i in range(6):
        h = jnp.maximum(lin(h, ws[i], bs[i]), 0.0)
    return lin(h, ws[6], bs[6])


if __name__ == "__main__":
    key = jax.random.PRNGKey(0)
    kx, kx2, kp = jax.random.split(key, 3)

    input_size = 3
    params = make_pnet_params(kp, input_size=input_size, hidden_size1=8,
                              hidden_size2=16, output_size=4)

    # Small smoke test (exercises the 2-step grid with a single inner sub-chunk).
    B = 8
    x = jax.random.normal(kx, (B, input_size), jnp.float32)
    out = jax.block_until_ready(pnet_forward(x, *params))
    ref = pnet_reference(x, *params)
    assert out.shape == (B, 4), out.shape
    assert jnp.allclose(out, ref, atol=5e-4, rtol=5e-4), "mismatch vs reference (B=8)"

    # Slightly larger batch (exercises padding + multiple unrolled inner sub-chunks).
    B2 = 1000
    x2 = jax.random.normal(kx2, (B2, input_size), jnp.float32)
    out2 = jax.block_until_ready(pnet_forward(x2, *params))
    ref2 = pnet_reference(x2, *params)
    assert out2.shape == (B2, 4), out2.shape
    assert jnp.allclose(out2, ref2, atol=5e-4, rtol=5e-4), "mismatch vs reference (B=1000)"

    print("KERNEL_OK")
</pallas_src>

<mosaic_0001>
module attributes {stable_mosaic.version = 11 : i64} {
  func.func @pnet_kernel(%arg0: i32, %arg1: memref<3x256xf32, #tpu.memory_space<vmem>>, %arg2: memref<8x3xbf16, #tpu.memory_space<vmem>>, %arg3: memref<8x1xf32, #tpu.memory_space<vmem>>, %arg4: memref<32x8xbf16, #tpu.memory_space<vmem>>, %arg5: memref<32x1xf32, #tpu.memory_space<vmem>>, %arg6: memref<64x32xbf16, #tpu.memory_space<vmem>>, %arg7: memref<64x1xf32, #tpu.memory_space<vmem>>, %arg8: memref<64x64xbf16, #tpu.memory_space<vmem>>, %arg9: memref<64x1xf32, #tpu.memory_space<vmem>>, %arg10: memref<32x64xbf16, #tpu.memory_space<vmem>>, %arg11: memref<32x1xf32, #tpu.memory_space<vmem>>, %arg12: memref<16x32xbf16, #tpu.memory_space<vmem>>, %arg13: memref<16x1xf32, #tpu.memory_space<vmem>>, %arg14: memref<4x16xbf16, #tpu.memory_space<vmem>>, %arg15: memref<4x1xf32, #tpu.memory_space<vmem>>, %arg16: memref<4x256xf32, #tpu.memory_space<vmem>>) attributes {dimension_semantics = [#tpu.dimension_semantics<parallel>], iteration_bounds = array<i64: 2>, scalar_prefetch = 0 : i64, scratch_operands = 0 : i64, tpu.core_type = #tpu.core_type<tc>, window_params = [{transform_indices = @transform_0, window_bounds = array<i64: 3, 256>}, {pipeline_mode = #tpu.pipeline_mode<synchronous>, transform_indices = @transform_1, window_bounds = array<i64: 8, 3>}, {pipeline_mode = #tpu.pipeline_mode<synchronous>, transform_indices = @transform_2, window_bounds = array<i64: 8, 1>}, {pipeline_mode = #tpu.pipeline_mode<synchronous>, transform_indices = @transform_3, window_bounds = array<i64: 32, 8>}, {pipeline_mode = #tpu.pipeline_mode<synchronous>, transform_indices = @transform_4, window_bounds = array<i64: 32, 1>}, {pipeline_mode = #tpu.pipeline_mode<synchronous>, transform_indices = @transform_5, window_bounds = array<i64: 64, 32>}, {pipeline_mode = #tpu.pipeline_mode<synchronous>, transform_indices = @transform_6, window_bounds = array<i64: 64, 1>}, {pipeline_mode = #tpu.pipeline_mode<synchronous>, transform_indices = @transform_7, window_bounds = array<i64: 64, 64>}, {pipeline_mode = #tpu.pipeline_mode<synchronous>, transform_indices = @transform_8, window_bounds = array<i64: 64, 1>}, {pipeline_mode = #tpu.pipeline_mode<synchronous>, transform_indices = @transform_9, window_bounds = array<i64: 32, 64>}, {pipeline_mode = #tpu.pipeline_mode<synchronous>, transform_indices = @transform_10, window_bounds = array<i64: 32, 1>}, {pipeline_mode = #tpu.pipeline_mode<synchronous>, transform_indices = @transform_11, window_bounds = array<i64: 16, 32>}, {pipeline_mode = #tpu.pipeline_mode<synchronous>, transform_indices = @transform_12, window_bounds = array<i64: 16, 1>}, {pipeline_mode = #tpu.pipeline_mode<synchronous>, transform_indices = @transform_13, window_bounds = array<i64: 4, 16>}, {pipeline_mode = #tpu.pipeline_mode<synchronous>, transform_indices = @transform_14, window_bounds = array<i64: 4, 1>}, {transform_indices = @transform_15, window_bounds = array<i64: 4, 256>}]} {
    %c0_i32 = arith.constant 0 : i32
    %c256_i32 = arith.constant 256 : i32
    %0 = arith.muli %c0_i32, %c256_i32 : i32
    %1 = tpu.assume_multiple %0, 256 : i32
    %c0 = arith.constant 0 : index
    %2 = arith.index_cast %1 : i32 to index
    %3 = vector.load %arg1[%c0, %2] : memref<3x256xf32, #tpu.memory_space<vmem>>, vector<3x256xf32>
    %c0_0 = arith.constant 0 : index
    %c0_1 = arith.constant 0 : index
    %4 = vector.load %arg2[%c0_0, %c0_1] : memref<8x3xbf16, #tpu.memory_space<vmem>>, vector<8x3xbf16>
    %5 = arith.truncf %3 : vector<3x256xf32> to vector<3x256xbf16>
    %cst = arith.constant dense<0.000000e+00> : vector<8x256xf32>
    %6 = tpu.matmul %4, %5, %cst {dimension_numbers = #tpu.dot_dimension_numbers<[1], [0], [0], [1], [0, 0, 1, 1], [], []>} : vector<8x3xbf16>, vector<3x256xbf16>, vector<8x256xf32> -> vector<8x256xf32>
    %c0_2 = arith.constant 0 : index
    %c0_3 = arith.constant 0 : index
    %7 = vector.load %arg3[%c0_2, %c0_3] : memref<8x1xf32, #tpu.memory_space<vmem>>, vector<8x1xf32>
    %8 = vector.broadcast %7 : vector<8x1xf32> to vector<8x256xf32>
    %9 = arith.addf %6, %8 : vector<8x256xf32>
    %cst_4 = arith.constant 0.000000e+00 : f32
    %10 = vector.broadcast %cst_4 : f32 to vector<8x256xf32>
    %11 = arith.maximumf %9, %10 : vector<8x256xf32>
    %c0_5 = arith.constant 0 : index
    %c0_6 = arith.constant 0 : index
    %12 = vector.load %arg4[%c0_5, %c0_6] : memref<32x8xbf16, #tpu.memory_space<vmem>>, vector<32x8xbf16>
    %13 = arith.truncf %11 : vector<8x256xf32> to vector<8x256xbf16>
    %cst_7 = arith.constant dense<0.000000e+00> : vector<32x256xf32>
    %14 = tpu.matmul %12, %13, %cst_7 {dimension_numbers = #tpu.dot_dimension_numbers<[1], [0], [0], [1], [0, 0, 1, 1], [], []>} : vector<32x8xbf16>, vector<8x256xbf16>, vector<32x256xf32> -> vector<32x256xf32>
    %c0_8 = arith.constant 0 : index
    %c0_9 = arith.constant 0 : index
    %15 = vector.load %arg5[%c0_8, %c0_9] : memref<32x1xf32, #tpu.memory_space<vmem>>, vector<32x1xf32>
    %16 = vector.broadcast %15 : vector<32x1xf32> to vector<32x256xf32>
    %17 = arith.addf %14, %16 : vector<32x256xf32>
    %cst_10 = arith.constant 0.000000e+00 : f32
    %18 = vector.broadcast %cst_10 : f32 to vector<32x256xf32>
    %19 = arith.maximumf %17, %18 : vector<32x256xf32>
    %c0_11 = arith.constant 0 : index
    %c0_12 = arith.constant 0 : index
    %20 = vector.load %arg6[%c0_11, %c0_12] : memref<64x32xbf16, #tpu.memory_space<vmem>>, vector<64x32xbf16>
    %21 = arith.truncf %19 : vector<32x256xf32> to vector<32x256xbf16>
    %cst_13 = arith.constant dense<0.000000e+00> : vector<64x256xf32>
    %22 = tpu.matmul %20, %21, %cst_13 {dimension_numbers = #tpu.dot_dimension_numbers<[1], [0], [0], [1], [0, 0, 1, 1], [], []>} : vector<64x32xbf16>, vector<32x256xbf16>, vector<64x256xf32> -> vector<64x256xf32>
    %c0_14 = arith.constant 0 : index
    %c0_15 = arith.constant 0 : index
    %23 = vector.load %arg7[%c0_14, %c0_15] : memref<64x1xf32, #tpu.memory_space<vmem>>, vector<64x1xf32>
    %24 = vector.broadcast %23 : vector<64x1xf32> to vector<64x256xf32>
    %25 = arith.addf %22, %24 : vector<64x256xf32>
    %cst_16 = arith.constant 0.000000e+00 : f32
    %26 = vector.broadcast %cst_16 : f32 to vector<64x256xf32>
    %27 = arith.maximumf %25, %26 : vector<64x256xf32>
    %c0_17 = arith.constant 0 : index
    %c0_18 = arith.constant 0 : index
    %28 = vector.load %arg8[%c0_17, %c0_18] : memref<64x64xbf16, #tpu.memory_space<vmem>>, vector<64x64xbf16>
    %29 = arith.truncf %27 : vector<64x256xf32> to vector<64x256xbf16>
    %cst_19 = arith.constant dense<0.000000e+00> : vector<64x256xf32>
    %30 = tpu.matmul %28, %29, %cst_19 {dimension_numbers = #tpu.dot_dimension_numbers<[1], [0], [0], [1], [0, 0, 1, 1], [], []>} : vector<64x64xbf16>, vector<64x256xbf16>, vector<64x256xf32> -> vector<64x256xf32>
    %c0_20 = arith.constant 0 : index
    %c0_21 = arith.constant 0 : index
    %31 = vector.load %arg9[%c0_20, %c0_21] : memref<64x1xf32, #tpu.memory_space<vmem>>, vector<64x1xf32>
    %32 = vector.broadcast %31 : vector<64x1xf32> to vector<64x256xf32>
    %33 = arith.addf %30, %32 : vector<64x256xf32>
    %cst_22 = arith.constant 0.000000e+00 : f32
    %34 = vector.broadcast %cst_22 : f32 to vector<64x256xf32>
    %35 = arith.maximumf %33, %34 : vector<64x256xf32>
    %c0_23 = arith.constant 0 : index
    %c0_24 = arith.constant 0 : index
    %36 = vector.load %arg10[%c0_23, %c0_24] : memref<32x64xbf16, #tpu.memory_space<vmem>>, vector<32x64xbf16>
    %37 = arith.truncf %35 : vector<64x256xf32> to vector<64x256xbf16>
    %cst_25 = arith.constant dense<0.000000e+00> : vector<32x256xf32>
    %38 = tpu.matmul %36, %37, %cst_25 {dimension_numbers = #tpu.dot_dimension_numbers<[1], [0], [0], [1], [0, 0, 1, 1], [], []>} : vector<32x64xbf16>, vector<64x256xbf16>, vector<32x256xf32> -> vector<32x256xf32>
    %c0_26 = arith.constant 0 : index
    %c0_27 = arith.constant 0 : index
    %39 = vector.load %arg11[%c0_26, %c0_27] : memref<32x1xf32, #tpu.memory_space<vmem>>, vector<32x1xf32>
    %40 = vector.broadcast %39 : vector<32x1xf32> to vector<32x256xf32>
    %41 = arith.addf %38, %40 : vector<32x256xf32>
    %cst_28 = arith.constant 0.000000e+00 : f32
    %42 = vector.broadcast %cst_28 : f32 to vector<32x256xf32>
    %43 = arith.maximumf %41, %42 : vector<32x256xf32>
    %c0_29 = arith.constant 0 : index
    %c0_30 = arith.constant 0 : index
    %44 = vector.load %arg12[%c0_29, %c0_30] : memref<16x32xbf16, #tpu.memory_space<vmem>>, vector<16x32xbf16>
    %45 = arith.truncf %43 : vector<32x256xf32> to vector<32x256xbf16>
    %cst_31 = arith.constant dense<0.000000e+00> : vector<16x256xf32>
    %46 = tpu.matmul %44, %45, %cst_31 {dimension_numbers = #tpu.dot_dimension_numbers<[1], [0], [0], [1], [0, 0, 1, 1], [], []>} : vector<16x32xbf16>, vector<32x256xbf16>, vector<16x256xf32> -> vector<16x256xf32>
    %c0_32 = arith.constant 0 : index
    %c0_33 = arith.constant 0 : index
    %47 = vector.load %arg13[%c0_32, %c0_33] : memref<16x1xf32, #tpu.memory_space<vmem>>, vector<16x1xf32>
    %48 = vector.broadcast %47 : vector<16x1xf32> to vector<16x256xf32>
    %49 = arith.addf %46, %48 : vector<16x256xf32>
    %cst_34 = arith.constant 0.000000e+00 : f32
    %50 = vector.broadcast %cst_34 : f32 to vector<16x256xf32>
    %51 = arith.maximumf %49, %50 : vector<16x256xf32>
    %c0_35 = arith.constant 0 : index
    %c0_36 = arith.constant 0 : index
    %52 = vector.load %arg14[%c0_35, %c0_36] : memref<4x16xbf16, #tpu.memory_space<vmem>>, vector<4x16xbf16>
    %53 = arith.truncf %51 : vector<16x256xf32> to vector<16x256xbf16>
    %cst_37 = arith.constant dense<0.000000e+00> : vector<4x256xf32>
    %54 = tpu.matmul %52, %53, %cst_37 {dimension_numbers = #tpu.dot_dimension_numbers<[1], [0], [0], [1], [0, 0, 1, 1], [], []>} : vector<4x16xbf16>, vector<16x256xbf16>, vector<4x256xf32> -> vector<4x256xf32>
    %c0_38 = arith.constant 0 : index
    %c0_39 = arith.constant 0 : index
    %55 = vector.load %arg15[%c0_38, %c0_39] : memref<4x1xf32, #tpu.memory_space<vmem>>, vector<4x1xf32>
    %56 = vector.broadcast %55 : vector<4x1xf32> to vector<4x256xf32>
    %57 = arith.addf %54, %56 : vector<4x256xf32>
    %c0_40 = arith.constant 0 : index
    %58 = arith.index_cast %1 : i32 to index
    %59 = vector.load %arg16[%c0_40, %58] : memref<4x256xf32, #tpu.memory_space<vmem>>, vector<4x256xf32>
    tpu.vector_store %arg16[%c0_40, %58], %57 {strides = array<i32>} : memref<4x256xf32, #tpu.memory_space<vmem>>, vector<4x256xf32>,
    %c1_i32 = arith.constant 1 : i32
    return
  }
  func.func @transform_0(%arg0: i32) -> (i32, i32) {
    %c0_i32 = arith.constant 0 : i32
    %c0_i32_0 = arith.constant 0 : i32
    return %c0_i32, %arg0 : i32, i32
  }
  func.func @transform_1(%arg0: i32) -> (i32, i32) {
    %c0_i32 = arith.constant 0 : i32
    %c0_i32_0 = arith.constant 0 : i32
    %c0_i32_1 = arith.constant 0 : i32
    return %c0_i32, %c0_i32_0 : i32, i32
  }
  func.func @transform_2(%arg0: i32) -> (i32, i32) {
    %c0_i32 = arith.constant 0 : i32
    %c0_i32_0 = arith.constant 0 : i32
    %c0_i32_1 = arith.constant 0 : i32
    return %c0_i32, %c0_i32_0 : i32, i32
  }
  func.func @transform_3(%arg0: i32) -> (i32, i32) {
    %c0_i32 = arith.constant 0 : i32
    %c0_i32_0 = arith.constant 0 : i32
    %c0_i32_1 = arith.constant 0 : i32
    return %c0_i32, %c0_i32_0 : i32, i32
  }
  func.func @transform_4(%arg0: i32) -> (i32, i32) {
    %c0_i32 = arith.constant 0 : i32
    %c0_i32_0 = arith.constant 0 : i32
    %c0_i32_1 = arith.constant 0 : i32
    return %c0_i32, %c0_i32_0 : i32, i32
  }
  func.func @transform_5(%arg0: i32) -> (i32, i32) {
    %c0_i32 = arith.constant 0 : i32
    %c0_i32_0 = arith.constant 0 : i32
    %c0_i32_1 = arith.constant 0 : i32
    return %c0_i32, %c0_i32_0 : i32, i32
  }
  func.func @transform_6(%arg0: i32) -> (i32, i32) {
    %c0_i32 = arith.constant 0 : i32
    %c0_i32_0 = arith.constant 0 : i32
    %c0_i32_1 = arith.constant 0 : i32
    return %c0_i32, %c0_i32_0 : i32, i32
  }
  func.func @transform_7(%arg0: i32) -> (i32, i32) {
    %c0_i32 = arith.constant 0 : i32
    %c0_i32_0 = arith.constant 0 : i32
    %c0_i32_1 = arith.constant 0 : i32
    return %c0_i32, %c0_i32_0 : i32, i32
  }
  func.func @transform_8(%arg0: i32) -> (i32, i32) {
    %c0_i32 = arith.constant 0 : i32
    %c0_i32_0 = arith.constant 0 : i32
    %c0_i32_1 = arith.constant 0 : i32
    return %c0_i32, %c0_i32_0 : i32, i32
  }
  func.func @transform_9(%arg0: i32) -> (i32, i32) {
    %c0_i32 = arith.constant 0 : i32
    %c0_i32_0 = arith.constant 0 : i32
    %c0_i32_1 = arith.constant 0 : i32
    return %c0_i32, %c0_i32_0 : i32, i32
  }
  func.func @transform_10(%arg0: i32) -> (i32, i32) {
    %c0_i32 = arith.constant 0 : i32
    %c0_i32_0 = arith.constant 0 : i32
    %c0_i32_1 = arith.constant 0 : i32
    return %c0_i32, %c0_i32_0 : i32, i32
  }
  func.func @transform_11(%arg0: i32) -> (i32, i32) {
    %c0_i32 = arith.constant 0 : i32
    %c0_i32_0 = arith.constant 0 : i32
    %c0_i32_1 = arith.constant 0 : i32
    return %c0_i32, %c0_i32_0 : i32, i32
  }
  func.func @transform_12(%arg0: i32) -> (i32, i32) {
    %c0_i32 = arith.constant 0 : i32
    %c0_i32_0 = arith.constant 0 : i32
    %c0_i32_1 = arith.constant 0 : i32
    return %c0_i32, %c0_i32_0 : i32, i32
  }
  func.func @transform_13(%arg0: i32) -> (i32, i32) {
    %c0_i32 = arith.constant 0 : i32
    %c0_i32_0 = arith.constant 0 : i32
    %c0_i32_1 = arith.constant 0 : i32
    return %c0_i32, %c0_i32_0 : i32, i32
  }
  func.func @transform_14(%arg0: i32) -> (i32, i32) {
    %c0_i32 = arith.constant 0 : i32
    %c0_i32_0 = arith.constant 0 : i32
    %c0_i32_1 = arith.constant 0 : i32
    return %c0_i32, %c0_i32_0 : i32, i32
  }
  func.func @transform_15(%arg0: i32) -> (i32, i32) {
    %c0_i32 = arith.constant 0 : i32
    %c0_i32_0 = arith.constant 0 : i32
    return %c0_i32, %arg0 : i32, i32
  }
}

</mosaic_0001>

<bundles_post_ra>
// kernel: pnet_forward.1
= control target key start
LH: loop header
LB: loop body
LE: loop exit
PB: predicated region body
PF: predicated region fallthrough
CT: control target
= control target key end

     0   :  { %s1509_s18 = smov 0   ;;  %s1690_s0 = inlined_call_operand.vmem [shape: f32[3,512], index: 0, kind: input, shape index: {}]   ;;  %s1691_s1 = inlined_call_operand.vmem [shape: bf16[8,3], index: 1, kind: input, shape index: {}]   ;;  %s1692_s2 = inlined_call_operand.vmem [shape: f32[8,1], index: 2, kind: input, shape index: {}]   ;;  %s1693_s3 = inlined_call_operand.vmem [shape: bf16[32,8], index: 3, kind: input, shape index: {}]   ;;  %s1694_s4 = inlined_call_operand.vmem [shape: f32[32,1], index: 4, kind: input, shape index: {}]   ;;  %s1695_s5 = inlined_call_operand.vmem [shape: bf16[64,32], index: 5, kind: input, shape index: {}]   ;;  %s1696_s6 = inlined_call_operand.vmem [shape: f32[64,1], index: 6, kind: input, shape index: {}]   ;;  %s1697_s7 = inlined_call_operand.vmem [shape: bf16[64,64], index: 7, kind: input, shape index: {}]   ;;  %s1698_s8 = inlined_call_operand.vmem [shape: f32[64,1], index: 8, kind: input, shape index: {}]   ;;  %s1699_s9 = inlined_call_operand.vmem [shape: bf16[32,64], index: 9, kind: input, shape index: {}]   ;;  %s1700_s10 = inlined_call_operand.vmem [shape: f32[32,1], index: 10, kind: input, shape index: {}]   ;;  %s1701_s11 = inlined_call_operand.vmem [shape: bf16[16,32], index: 11, kind: input, shape index: {}]   ;;  %s1702_s12 = inlined_call_operand.vmem [shape: f32[16,1], index: 12, kind: input, shape index: {}]   ;;  %s1703_s13 = inlined_call_operand.vmem [shape: bf16[4,16], index: 13, kind: input, shape index: {}]   ;;  %s1704_s14 = inlined_call_operand.vmem [shape: f32[4,1], index: 14, kind: input, shape index: {}]   ;;  %s1705_s15 = inlined_call_operand.vmem [shape: f32[4,512], index: 15, kind: output, shape index: {}]  }
   0x1 LB: > { %s1353_s19 = sadd.s32 4294967295, %s1425_s18   ;;  %p1357_p0 = scmp.ge.s32.totalorder %s1425_s18, 1  ;;  %s1425_s18 = sphi %s1509_s18, %s25_s18  }
   0x2   : > { %p438_p1 = scmp.lt.s32.totalorder %s1425_s18, 3 }
   0x4   : > { %p439_p2 = pnand %p1357_p0, %p438_p1 }
   0x5   : > { %s1358_s20 = sshll.u32 (!%p439_p2), %s1353_s19, 1  ;;  %vm516_vm0 = vcmask (!%p439_p2), 1040384   ;;  %v506_v0 = vld [vmem:[%s1692_s2] sm:$0xff] (!%p439_p2)  ;;  %v1427_v1 = vmov (!%p439_p2), 0   ;;  %vm517_vm1 = vcmask (!%p439_p2), 1041408   ;;  %v1428_v2 = vmov (!%p439_p2), 65535  }
   0x6   : > { %442 = sbr.rel (%p439_p2) target bundleno = 1657 (0x679), region = 80  ;;  %p487_p3 = scmp.lt.s32.totalorder (!%p439_p2), %s1358_s20, 3  ;;  %558 = vmatprep.mubr.bf16.mxu0 (!%p439_p2), %v1427_v1  ;;  %1403 = vset.pattern.permute.xlu0 (!%p439_p2), %v1427_v1  ;;  %v518_v3 = vsel (!%p439_p2), %vm516_vm0, 4294967295, %v1428_v2  ;;  %v575_v4 = vld [vmem:[%s1694_s4] sm:$0xff] (!%p439_p2)  ;;  %v578_v6 = vld [vmem:[%s1694_s4 + $0x18] sm:$0xff] (!%p439_p2)  ;;  %v697_v10 = vld [vmem:[%s1696_s6 + $0x8] sm:$0xff] (!%p439_p2) }
   0x7   : > { %509 = vperm.xlu0 (!%p439_p2), %1403, %v506_v0   ;;  %655 = vmatprep.mubr.bf16.mxu1 (!%p439_p2), %v1427_v1  ;;  %v519_v5 = vsel (!%p439_p2), %vm517_vm1, %v518_v3, 0  ;;  %v500_v14 = vld [vmem:[%s1691_s1] sm:$0xf] (!%p439_p2)  ;;  %vm512_vm2 = vcmask (!%p439_p2), 23552   ;;  %v699_v15 = vld [vmem:[%s1696_s6 + $0x18] sm:$0xff] (!%p439_p2)  ;;  %v701_v16 = vld [vmem:[%s1696_s6 + $0x28] sm:$0xff] (!%p439_p2) }
   0x8   : > { %1404 = vset.pattern.permute.xlu1 (!%p439_p2), %v1427_v1  ;;  %v703_v17 = vld [vmem:[%s1696_s6 + $0x38] sm:$0xff] (!%p439_p2)  ;;  %v883_v18 = vld [vmem:[%s1698_s8 + $0x8] sm:$0xff] (!%p439_p2)  ;;  %v577_v26 = vld [vmem:[%s1694_s4 + $0x10] sm:$0xff] (!%p439_p2)  ;;  %vm616_vm3 = vcmask (!%p439_p2), 1043456   ;;  %vm609_vm4 = vcmask (!%p439_p2), 64512   ;;  %vm764_vm5 = vcmask (!%p439_p2), 261120  }
   0x9   : > { %v885_v19 = vld [vmem:[%s1698_s8 + $0x18] sm:$0xff] (!%p439_p2)  ;;  %v887_v20 = vld [vmem:[%s1698_s8 + $0x28] sm:$0xff] (!%p439_p2)  ;;  %v696_v27 = vld [vmem:[%s1696_s6] sm:$0xff] (!%p439_p2)  ;;  %vm950_vm6 = vcmask (!%p439_p2), 523264   ;;  %vm1247_vm7 = vcmask (!%p439_p2), 130048  }
   0xa   : > { %v889_v21 = vld [vmem:[%s1698_s8 + $0x38] sm:$0xff] (!%p439_p2)  ;;  %v1065_v22 = vld [vmem:[%s1700_s10 + $0x8] sm:$0xff] (!%p439_p2)  ;;  %v698_v28 = vld [vmem:[%s1696_s6 + $0x10] sm:$0xff] (!%p439_p2) }
   0xb   : > { %581 = vperm.xlu0 (!%p439_p2), %1403, %v575_v4   ;;  %v1067_v23 = vld [vmem:[%s1700_s10 + $0x18] sm:$0xff] (!%p439_p2)  ;;  %v1172_v24 = vld [vmem:[%s1702_s12 + $0x8] sm:$0xff] (!%p439_p2)  ;;  %v700_v29 = vld [vmem:[%s1696_s6 + $0x20] sm:$0xff] (!%p439_p2) }
   0xc   : > { %v576_v25 = vld [vmem:[%s1694_s4 + $0x8] sm:$0xff] (!%p439_p2)  ;;  %v702_v30 = vld [vmem:[%s1696_s6 + $0x30] sm:$0xff] (!%p439_p2)  ;;  %v882_v31 = vld [vmem:[%s1698_s8] sm:$0xff] (!%p439_p2) }
   0xd   : > { %s1707_s20 = smov (!%p487_p3, %s1358_s20), 3  ;;  %586 = vperm.xlu1 %1404, %v576_v25   ;;  %v884_v32 = vld [vmem:[%s1698_s8 + $0x10] sm:$0xff]  ;;  %v886_v33 = vld [vmem:[%s1698_s8 + $0x20] sm:$0xff]  ;;  %v1407_v52 = vld [vmem:[%s1693_s3 + $0x8] sm:$0xff]  }
   0xe   : > { %s1359_s25 = sshll.u32 %s1707_s20, 2  ;;  %v888_v34 = vld [vmem:[%s1698_s8 + $0x30] sm:$0xff]  ;;  %v1064_v35 = vld [vmem:[%s1700_s10] sm:$0xff]  ;;  %v1411_v25 = vld [vmem:[%s1695_s5 + $0x18] sm:$0xff]  }
   0xf   : > { %s490_s30 = scalar_lea.vmem %s1690_s0, %s1359_s25  ;;  %596 = vperm.xlu0 %1403, %v578_v6   ;;  %v1066_v36 = vld [vmem:[%s1700_s10 + $0x10] sm:$0xff]  ;;  %v1171_v37 = vld [vmem:[%s1702_s12] sm:$0xff]  ;;  %s496_s29 = scalar_lea.vmem %s1705_s15, %s1359_s25 }
  0x10   : > { %v499_v7 = vld [vmem:[%s490_s30] sm:$0x77] }
  0x11   : > { %v502_v8 = vcombine.high %v499_v7, %v499_v7  ;;  %v504_v9 = vpack.c.bf16 %v499_v7, %v499_v7  ;;  %591 = vperm.xlu1 %1404, %v577_v26   ;;  %v1241_v38 = vld [vmem:[%s1704_s14] sm:$0xf] }
  0x12   : > { %v1406_v51 = vld [vmem:[%s1693_s3] sm:$0xff]  }
  0x13   : > { %v505_v11 = vpack.c.bf16 %v502_v8, %v502_v8  ;;  %v521_v12 = vand.u32 %v519_v5, %v504_v9  ;;  %711 = vperm.xlu0 %1403, %v697_v10  }
  0x15   : > { %v524_v13 = vand.u32 %v519_v5, %v505_v11  ;;  %706 = vperm.xlu1 %1404, %v696_v27  }
  0x17   : > { %526 = vmatprep.subr.bf16.mxu0 %v524_v13  ;;  %721 = vperm.xlu0 %1403, %v699_v15  }
  0x18   : > { %527 = vmatpush1.bf16.msra.mxu0 %v521_v12 }
  0x19   : > { %716 = vperm.xlu1 %1404, %v698_v28  }
  0x1b   : > { %1362 = vmatmul.mubr.msk.bf16.vlgmr.msra.gmra.mrb[0].mxu0 %vm512_vm2, %v500_v14  ;;  %731 = vperm.xlu0 %1403, %v701_v16  }
  0x1c   : > { %809 = vmatprep.mubr.bf16.mxu0 %v1427_v1 }
  0x1d   : > { %726 = vperm.xlu1 %1404, %v700_v29  }
  0x1f   : > { %741 = vperm.xlu0 %1403, %v703_v17  }
  0x21   : > { %736 = vperm.xlu1 %1404, %v702_v30  }
  0x23   : > { %897 = vperm.xlu0 %1403, %v883_v18  }
  0x25   : > { %892 = vperm.xlu1 %1404, %v882_v31  }
  0x27   : > { %907 = vperm.xlu0 %1403, %v885_v19  }
  0x29   : > { %902 = vperm.xlu1 %1404, %v884_v32  }
  0x2b   : > { %917 = vperm.xlu0 %1403, %v887_v20  }
  0x2d   : > { %912 = vperm.xlu1 %1404, %v886_v33  }
  0x2f   : > { %927 = vperm.xlu0 %1403, %v889_v21  }
  0x31   : > { %922 = vperm.xlu1 %1404, %v888_v34  }
  0x33   : > { %1075 = vperm.xlu0 %1403, %v1065_v22   ;;  %v1408_v22 = vld [vmem:[%s1695_s5] sm:$0xff]  }
  0x35   : > { %1070 = vperm.xlu1 %1404, %v1064_v35  }
  0x37   : > { %1085 = vperm.xlu0 %1403, %v1067_v23   ;;  %v1409_v23 = vld [vmem:[%s1695_s5 + $0x8] sm:$0xff]  }
  0x39   : > { %1080 = vperm.xlu1 %1404, %v1066_v36  }
  0x3b   : > { %1180 = vperm.xlu0 %1403, %v1172_v24   ;;  %v1410_v24 = vld [vmem:[%s1695_s5 + $0x10] sm:$0xff]  }
  0x3d   : > { %1175 = vperm.xlu1 %1404, %v1171_v37  }
  0x41   : > { %1244 = vperm.xlu1 %1404, %v1241_v38  }
  0x86   : > { %v510_v39 = vpop.permute.xlu0 %509 }
  0x8a   : > { %v582_v53 = vpop.permute.xlu0 %581 }
  0x8c   : > { %v587_v57 = vpop.permute.xlu1 %586 }
  0x8e   : > { %v597_v10 = vpop.permute.xlu0 %596 }
  0x90   : > { %v592_v5 = vpop.permute.xlu1 %591 }
  0x92   : > { %v712_v30 = vpop.permute.xlu0 %711 }
  0x94   : > { %v707_v26 = vpop.permute.xlu1 %706 }
  0xee   : > { %v560_v40 = vpop.f32.mrb[0].mxu0 }
  0xef   : > { %v561_v41 = vadd.f32 %v560_v40, %v510_v39  ;;  %v562_v42 = vpop.f32.mrb[1].mxu0 }
  0xf0   : > { %v563_v43 = vadd.f32 %v562_v42, %v510_v39  ;;  %v564_v44 = vpop.f32.mrb[2].mxu0 }
  0xf1   : > { %v567_v45 = vmax.f32 %v561_v41, 0.0  ;;  %v565_v46 = vpop.f32.mrb[3].mxu0  ;;  %v717_v41 = vpop.permute.xlu1 %716 }
  0xf2   : > { %v568_v47 = vmax.f32 %v563_v43, 0.0  ;;  %v722_v46 = vpop.permute.xlu0 %721 }
  0xf3   : > { %v573_v48 = vpack.c.bf16 %v567_v45, %v567_v45 }
  0xf4   : > { %v574_v49 = vpack.c.bf16 %v568_v47, %v568_v47 }
  0xf5   : > { %v618_v50 = vsel %vm616_vm3, %v573_v48, 0 }
  0xf6   : > { %1365 = vmatprep.subr.msk.bf16.mxu1 %vm616_vm3, %v574_v49 }
  0xf7   : > { %624 = vmatpush1.bf16.msra.mxu1 %v618_v50 }
  0xfa   : > { %1366 = vmatmul.mubr.msk.bf16.vlgmr.msra.gmra.mrb[0].mxu1 %vm609_vm4, %v1406_v51 }
  0xfb   : > { %665 = vmatprep.mubr.bf16.mxu1 %v1427_v1 }
 0x102   : > { %1367 = vmatmul.mubr.msk.bf16.gmra.mrb[4].mxu1 %vm609_vm4, %v1407_v52 }
 0x103   : > { %995 = vmatprep.mubr.bf16.mxu1 %v1427_v1 }
 0x1cd   : > { %v657_v54 = vpop.f32.mrb[0].mxu1 }
 0x1ce   : > { %v658_v55 = vadd.f32 %v657_v54, %v582_v53  ;;  %v659_v56 = vpop.f32.mrb[1].mxu1 }
 0x1cf   : > { %v660_v58 = vadd.f32 %v659_v56, %v582_v53  ;;  %v661_v59 = vpop.f32.mrb[2].mxu1 }
 0x1d0   : > { %v662_v60 = vadd.f32 %v661_v59, %v587_v57  ;;  %v663_v61 = vpop.f32.mrb[3].mxu1  ;;  %v676_v63 = vmax.f32 %v658_v55, 0.0 }
 0x1d1   : > { %v664_v62 = vadd.f32 %v663_v61, %v587_v57  ;;  %v677_v2 = vmax.f32 %v660_v58, 0.0  ;;  %v727_v57 = vpop.permute.xlu1 %726 }
 0x1d2   : > { %v678_v0 = vmax.f32 %v662_v60, 0.0 }
 0x1d3   : > { %v679_v3 = vmax.f32 %v664_v62, 0.0  ;;  %v732_v62 = vpop.permute.xlu0 %731 }
 0x1d4   : > { %v692_v4 = vpack.c.bf16 %v678_v0, %v676_v63 }
 0x1d5   : > { %v693_v6 = vpack.c.bf16 %v679_v3, %v677_v2  ;;  %v667_v7 = vpop.f32.mrb[4].mxu1 }
 0x1d6   : > { %v668_v8 = vadd.f32 %v667_v7, %v592_v5  ;;  %v669_v9 = vpop.f32.mrb[5].mxu1 }
 0x1d7   : > { %v670_v11 = vadd.f32 %v669_v9, %v592_v5  ;;  %v671_v12 = vpop.f32.mrb[6].mxu1  ;;  %777 = vmatprep.subr.bf16.mxu0 %v693_v6 }
 0x1d8   : > { %v672_v13 = vadd.f32 %v671_v12, %v597_v10  ;;  %v673_v14 = vpop.f32.mrb[7].mxu1  ;;  %778 = vmatpush1.bf16.msra.mxu0 %v692_v4  ;;  %v680_v16 = vmax.f32 %v668_v8, 0.0 }
 0x1d9   : > { %v674_v15 = vadd.f32 %v673_v14, %v597_v10  ;;  %v681_v18 = vmax.f32 %v670_v11, 0.0  ;;  %v737_v10 = vpop.permute.xlu1 %736 }
 0x1da   : > { %v682_v17 = vmax.f32 %v672_v13, 0.0 }
 0x1db   : > { %v683_v19 = vmax.f32 %v674_v15, 0.0  ;;  %v742_v15 = vpop.permute.xlu0 %741 }
 0x1dc   : > { %v694_v20 = vpack.c.bf16 %v682_v17, %v680_v16 }
 0x1dd   : > { %v695_v21 = vpack.c.bf16 %v683_v19, %v681_v18 }
 0x1df   : > { %779 = vmatprep.subr.bf16.mxu0 %v695_v21 }
 0x1e0   : > { %780 = vmatpush1.bf16.msra.mxu0 %v694_v20 }
 0x1e3   : > { %1372 = vmatmul.mubr.msk.bf16.vlgmr.msra.gmra.mrb[4].mxu0 %vm764_vm5, %v1408_v22 }
 0x1e4   : > { %819 = vmatprep.mubr.bf16.mxu0 %v1427_v1 }
 0x1eb   : > { %1373 = vmatmul.mubr.msk.bf16.gmra.mrb[8].mxu0 %vm764_vm5, %v1409_v23 }
 0x1ec   : > { %829 = vmatprep.mubr.bf16.mxu0 %v1427_v1 }
 0x1f3   : > { %1374 = vmatmul.mubr.msk.bf16.gmra.mrb[12].mxu0 %vm764_vm5, %v1410_v24 }
 0x1f4   : > { %839 = vmatprep.mubr.bf16.mxu0 %v1427_v1 }
 0x1fb   : > { %1375 = vmatmul.mubr.msk.bf16.gmra.mrb[16].mxu0 %vm764_vm5, %v1411_v25 }
 0x1fc   : > { %1136 = vmatprep.mubr.bf16.mxu0 %v1427_v1 }
 0x2b6   : > { %v811_v27 = vpop.f32.mrb[4].mxu0 }
 0x2b7   : > { %v812_v28 = vadd.f32 %v811_v27, %v707_v26  ;;  %v813_v29 = vpop.f32.mrb[5].mxu0  ;;  %v1412_v27 = vld [vmem:[%s1697_s7] sm:$0xff]  }
 0x2b8   : > { %v814_v31 = vadd.f32 %v813_v29, %v707_v26  ;;  %v815_v32 = vpop.f32.mrb[6].mxu0  ;;  %v1414_v29 = vld [vmem:[%s1697_s7 + $0x10] sm:$0xff]  }
 0x2b9   : > { %v816_v33 = vadd.f32 %v815_v32, %v712_v30  ;;  %v817_v34 = vpop.f32.mrb[7].mxu0  ;;  %v850_v36 = vmax.f32 %v812_v28, 0.0  ;;  %v1413_v28 = vld [vmem:[%s1697_s7 + $0x8] sm:$0xff]  }
 0x2ba   : > { %v818_v35 = vadd.f32 %v817_v34, %v712_v30  ;;  %v851_v38 = vmax.f32 %v814_v31, 0.0  ;;  %v1415_v30 = vld [vmem:[%s1697_s7 + $0x18] sm:$0xff]   ;;  %v893_v31 = vpop.permute.xlu1 %892 }
 0x2bb   : > { %v852_v37 = vmax.f32 %v816_v33, 0.0 }
 0x2bc   : > { %v853_v39 = vmax.f32 %v818_v35, 0.0  ;;  %v898_v35 = vpop.permute.xlu0 %897 }
 0x2bd   : > { %v874_v40 = vpack.c.bf16 %v852_v37, %v850_v36 }
 0x2be   : > { %v875_v42 = vpack.c.bf16 %v853_v39, %v851_v38  ;;  %v821_v43 = vpop.f32.mrb[8].mxu0 }
 0x2bf   : > { %v822_v44 = vadd.f32 %v821_v43, %v717_v41  ;;  %v823_v45 = vpop.f32.mrb[9].mxu0 }
 0x2c0   : > { %v824_v47 = vadd.f32 %v823_v45, %v717_v41  ;;  %v825_v48 = vpop.f32.mrb[10].mxu0  ;;  %963 = vmatprep.subr.bf16.mxu1 %v875_v42 }
 0x2c1   : > { %v826_v49 = vadd.f32 %v825_v48, %v722_v46  ;;  %v827_v50 = vpop.f32.mrb[11].mxu0  ;;  %964 = vmatpush1.bf16.msra.mxu1 %v874_v40  ;;  %v854_v52 = vmax.f32 %v822_v44, 0.0 }
 0x2c2   : > { %v828_v51 = vadd.f32 %v827_v50, %v722_v46  ;;  %v855_v54 = vmax.f32 %v824_v47, 0.0  ;;  %v903_v46 = vpop.permute.xlu1 %902 }
 0x2c3   : > { %v856_v53 = vmax.f32 %v826_v49, 0.0 }
 0x2c4   : > { %v857_v55 = vmax.f32 %v828_v51, 0.0  ;;  %v908_v51 = vpop.permute.xlu0 %907 }
 0x2c5   : > { %v876_v56 = vpack.c.bf16 %v856_v53, %v854_v52 }
 0x2c6   : > { %v877_v58 = vpack.c.bf16 %v857_v55, %v855_v54  ;;  %v831_v59 = vpop.f32.mrb[12].mxu0 }
 0x2c7   : > { %v832_v60 = vadd.f32 %v831_v59, %v727_v57  ;;  %v833_v61 = vpop.f32.mrb[13].mxu0 }
 0x2c8   : > { %v834_v63 = vadd.f32 %v833_v61, %v727_v57  ;;  %v835_v0 = vpop.f32.mrb[14].mxu0  ;;  %965 = vmatprep.subr.bf16.mxu1 %v877_v58 }
 0x2c9   : > { %v836_v2 = vadd.f32 %v835_v0, %v732_v62  ;;  %v837_v3 = vpop.f32.mrb[15].mxu0  ;;  %966 = vmatpush1.bf16.msra.mxu1 %v876_v56  ;;  %v858_v5 = vmax.f32 %v832_v60, 0.0 }
 0x2ca   : > { %v838_v4 = vadd.f32 %v837_v3, %v732_v62  ;;  %v859_v7 = vmax.f32 %v834_v63, 0.0  ;;  %v913_v62 = vpop.permute.xlu1 %912 }
 0x2cb   : > { %v860_v6 = vmax.f32 %v836_v2, 0.0 }
 0x2cc   : > { %v861_v8 = vmax.f32 %v838_v4, 0.0  ;;  %v918_v4 = vpop.permute.xlu0 %917 }
 0x2cd   : > { %v878_v9 = vpack.c.bf16 %v860_v6, %v858_v5 }
 0x2ce   : > { %v879_v11 = vpack.c.bf16 %v861_v8, %v859_v7  ;;  %v841_v12 = vpop.f32.mrb[16].mxu0 }
 0x2cf   : > { %v842_v13 = vadd.f32 %v841_v12, %v737_v10  ;;  %v843_v14 = vpop.f32.mrb[17].mxu0 }
 0x2d0   : > { %v844_v16 = vadd.f32 %v843_v14, %v737_v10  ;;  %v845_v17 = vpop.f32.mrb[18].mxu0  ;;  %967 = vmatprep.subr.bf16.mxu1 %v879_v11 }
 0x2d1   : > { %v846_v18 = vadd.f32 %v845_v17, %v742_v15  ;;  %v847_v19 = vpop.f32.mrb[19].mxu0  ;;  %968 = vmatpush1.bf16.msra.mxu1 %v878_v9  ;;  %v862_v21 = vmax.f32 %v842_v13, 0.0 }
 0x2d2   : > { %v848_v20 = vadd.f32 %v847_v19, %v742_v15  ;;  %v863_v23 = vmax.f32 %v844_v16, 0.0  ;;  %v923_v15 = vpop.permute.xlu1 %922 }
 0x2d3   : > { %v864_v22 = vmax.f32 %v846_v18, 0.0 }
 0x2d4   : > { %v865_v24 = vmax.f32 %v848_v20, 0.0  ;;  %v928_v20 = vpop.permute.xlu0 %927 }
 0x2d5   : > { %v880_v25 = vpack.c.bf16 %v864_v22, %v862_v21 }
 0x2d6   : > { %v881_v26 = vpack.c.bf16 %v865_v24, %v863_v23 }
 0x2d8   : > { %969 = vmatprep.subr.bf16.mxu1 %v881_v26 }
 0x2d9   : > { %970 = vmatpush1.bf16.msra.mxu1 %v880_v25 }
 0x2dc   : > { %1380 = vmatmul.mubr.msk.bf16.vlgmr.msra.gmra.mrb[8].mxu1 %vm950_vm6, %v1412_v27 }
 0x2dd   : > { %1005 = vmatprep.mubr.bf16.mxu1 %v1427_v1 }
 0x2e4   : > { %1381 = vmatmul.mubr.msk.bf16.gmra.mrb[12].mxu1 %vm950_vm6, %v1413_v28 }
 0x2e5   : > { %1015 = vmatprep.mubr.bf16.mxu1 %v1427_v1 }
 0x2ec   : > { %1382 = vmatmul.mubr.msk.bf16.gmra.mrb[16].mxu1 %vm950_vm6, %v1414_v29 }
 0x2ed   : > { %1025 = vmatprep.mubr.bf16.mxu1 %v1427_v1 }
 0x2f4   : > { %1383 = vmatmul.mubr.msk.bf16.gmra.mrb[20].mxu1 %vm950_vm6, %v1415_v30 }
 0x2f5   : > { %1223 = vmatprep.mubr.bf16.mxu1 %v1427_v1 }
 0x3af   : > { %v997_v32 = vpop.f32.mrb[8].mxu1 }
 0x3b0   : > { %v998_v33 = vadd.f32 %v997_v32, %v893_v31  ;;  %v999_v34 = vpop.f32.mrb[9].mxu1  ;;  %v1416_v32 = vld [vmem:[%s1699_s9] sm:$0xff]  }
 0x3b1   : > { %v1000_v36 = vadd.f32 %v999_v34, %v893_v31  ;;  %v1001_v37 = vpop.f32.mrb[10].mxu1  ;;  %v1071_v34 = vpop.permute.xlu1 %1070 }
 0x3b2   : > { %v1002_v38 = vadd.f32 %v1001_v37, %v898_v35  ;;  %v1003_v39 = vpop.f32.mrb[11].mxu1  ;;  %v1036_v41 = vmax.f32 %v998_v33, 0.0  ;;  %v1417_v33 = vld [vmem:[%s1699_s9 + $0x8] sm:$0xff]  }
 0x3b3   : > { %v1004_v40 = vadd.f32 %v1003_v39, %v898_v35  ;;  %v1037_v43 = vmax.f32 %v1000_v36, 0.0 }
 0x3b4   : > { %v1038_v42 = vmax.f32 %v1002_v38, 0.0  ;;  %v1076_v38 = vpop.permute.xlu0 %1075 }
 0x3b5   : > { %v1039_v44 = vmax.f32 %v1004_v40, 0.0 }
 0x3b6   : > { %v1056_v45 = vpack.c.bf16 %v1038_v42, %v1036_v41 }
 0x3b7   : > { %v1057_v47 = vpack.c.bf16 %v1039_v44, %v1037_v43  ;;  %v1007_v48 = vpop.f32.mrb[12].mxu1 }
 0x3b8   : > { %v1008_v49 = vadd.f32 %v1007_v48, %v903_v46  ;;  %v1009_v50 = vpop.f32.mrb[13].mxu1 }
 0x3b9   : > { %v1010_v52 = vadd.f32 %v1009_v50, %v903_v46  ;;  %v1011_v53 = vpop.f32.mrb[14].mxu1  ;;  %1104 = vmatprep.subr.bf16.mxu0 %v1057_v47 }
 0x3ba   : > { %v1012_v54 = vadd.f32 %v1011_v53, %v908_v51  ;;  %v1013_v55 = vpop.f32.mrb[15].mxu1  ;;  %1105 = vmatpush1.bf16.msra.mxu0 %v1056_v45  ;;  %v1040_v57 = vmax.f32 %v1008_v49, 0.0  ;;  %v1081_v49 = vpop.permute.xlu1 %1080 }
 0x3bb   : > { %v1014_v56 = vadd.f32 %v1013_v55, %v908_v51  ;;  %v1041_v59 = vmax.f32 %v1010_v52, 0.0  ;;  %v1086_v53 = vpop.permute.xlu0 %1085 }
 0x3bc   : > { %v1042_v58 = vmax.f32 %v1012_v54, 0.0 }
 0x3bd   : > { %v1043_v60 = vmax.f32 %v1014_v56, 0.0 }
 0x3be   : > { %v1058_v61 = vpack.c.bf16 %v1042_v58, %v1040_v57 }
 0x3bf   : > { %v1059_v63 = vpack.c.bf16 %v1043_v60, %v1041_v59  ;;  %v1017_v0 = vpop.f32.mrb[16].mxu1 }
 0x3c0   : > { %v1018_v2 = vadd.f32 %v1017_v0, %v913_v62  ;;  %v1019_v3 = vpop.f32.mrb[17].mxu1 }
 0x3c1   : > { %v1020_v5 = vadd.f32 %v1019_v3, %v913_v62  ;;  %v1021_v6 = vpop.f32.mrb[18].mxu1  ;;  %1106 = vmatprep.subr.bf16.mxu0 %v1059_v63  ;;  %v1176_v3 = vpop.permute.xlu1 %1175 }
 0x3c2   : > { %v1022_v7 = vadd.f32 %v1021_v6, %v918_v4  ;;  %v1023_v8 = vpop.f32.mrb[19].mxu1  ;;  %1107 = vmatpush1.bf16.msra.mxu0 %v1058_v61  ;;  %v1044_v10 = vmax.f32 %v1018_v2, 0.0  ;;  %v1418_v2 = vld [vmem:[%s1701_s11] sm:$0xff]  }
 0x3c3   : > { %v1024_v9 = vadd.f32 %v1023_v8, %v918_v4  ;;  %v1045_v12 = vmax.f32 %v1020_v5, 0.0 }
 0x3c4   : > { %v1046_v11 = vmax.f32 %v1022_v7, 0.0  ;;  %v1181_v7 = vpop.permute.xlu0 %1180 }
 0x3c5   : > { %v1047_v13 = vmax.f32 %v1024_v9, 0.0 }
 0x3c6   : > { %v1060_v14 = vpack.c.bf16 %v1046_v11, %v1044_v10 }
 0x3c7   : > { %v1061_v16 = vpack.c.bf16 %v1047_v13, %v1045_v12  ;;  %v1027_v17 = vpop.f32.mrb[20].mxu1 }
 0x3c8   : > { %v1028_v18 = vadd.f32 %v1027_v17, %v923_v15  ;;  %v1029_v19 = vpop.f32.mrb[21].mxu1 }
 0x3c9   : > { %v1030_v21 = vadd.f32 %v1029_v19, %v923_v15  ;;  %v1031_v22 = vpop.f32.mrb[22].mxu1  ;;  %1108 = vmatprep.subr.bf16.mxu0 %v1061_v16  ;;  %v1238_v19 = vld [vmem:[%s1703_s13] sm:$0x3] }
 0x3ca   : > { %v1032_v23 = vadd.f32 %v1031_v22, %v928_v20  ;;  %v1033_v24 = vpop.f32.mrb[23].mxu1  ;;  %1109 = vmatpush1.bf16.msra.mxu0 %v1060_v14  ;;  %v1048_v26 = vmax.f32 %v1028_v18, 0.0 }
 0x3cb   : > { %v1034_v25 = vadd.f32 %v1033_v24, %v928_v20  ;;  %v1049_v28 = vmax.f32 %v1030_v21, 0.0  ;;  %v1245_v20 = vpop.permute.xlu1 %1244 }
 0x3cc   : > { %v1050_v27 = vmax.f32 %v1032_v23, 0.0 }
 0x3cd   : > { %v1051_v29 = vmax.f32 %v1034_v25, 0.0 }
 0x3ce   : > { %v1062_v30 = vpack.c.bf16 %v1050_v27, %v1048_v26 }
 0x3cf   : > { %v1063_v31 = vpack.c.bf16 %v1051_v29, %v1049_v28 }
 0x3d1   : > { %1110 = vmatprep.subr.bf16.mxu0 %v1063_v31 }
 0x3d2   : > { %1111 = vmatpush1.bf16.msra.mxu0 %v1062_v30 }
 0x3d5   : > { %1386 = vmatmul.mubr.msk.bf16.vlgmr.msra.gmra.mrb[20].mxu0 %vm950_vm6, %v1416_v32 }
 0x3d6   : > { %1146 = vmatprep.mubr.bf16.mxu0 %v1427_v1 }
 0x3dd   : > { %1387 = vmatmul.mubr.msk.bf16.gmra.mrb[24].mxu0 %vm950_vm6, %v1417_v33 }
 0x3de   : > { %1283 = vmatprep.mubr.bf16.mxu0 %v1427_v1 }
 0x4a8   : > { %v1138_v35 = vpop.f32.mrb[20].mxu0 }
 0x4a9   : > { %v1139_v36 = vadd.f32 %v1138_v35, %v1071_v34  ;;  %v1140_v37 = vpop.f32.mrb[21].mxu0 }
 0x4aa   : > { %v1141_v39 = vadd.f32 %v1140_v37, %v1071_v34  ;;  %v1142_v40 = vpop.f32.mrb[22].mxu0 }
 0x4ab   : > { %v1143_v41 = vadd.f32 %v1142_v40, %v1076_v38  ;;  %v1144_v42 = vpop.f32.mrb[23].mxu0  ;;  %v1157_v44 = vmax.f32 %v1139_v36, 0.0 }
 0x4ac   : > { %v1145_v43 = vadd.f32 %v1144_v42, %v1076_v38  ;;  %v1158_v46 = vmax.f32 %v1141_v39, 0.0 }
 0x4ad   : > { %v1159_v45 = vmax.f32 %v1143_v41, 0.0 }
 0x4ae   : > { %v1160_v47 = vmax.f32 %v1145_v43, 0.0 }
 0x4af   : > { %v1167_v48 = vpack.c.bf16 %v1159_v45, %v1157_v44 }
 0x4b0   : > { %v1168_v50 = vpack.c.bf16 %v1160_v47, %v1158_v46  ;;  %v1148_v51 = vpop.f32.mrb[24].mxu0 }
 0x4b1   : > { %v1149_v52 = vadd.f32 %v1148_v51, %v1081_v49  ;;  %v1150_v1 = vpop.f32.mrb[25].mxu0 }
 0x4b2   : > { %v1151_v54 = vadd.f32 %v1150_v1, %v1081_v49  ;;  %v1152_v55 = vpop.f32.mrb[26].mxu0  ;;  %1191 = vmatprep.subr.bf16.mxu1 %v1168_v50 }
 0x4b3   : > { %v1153_v56 = vadd.f32 %v1152_v55, %v1086_v53  ;;  %v1154_v57 = vpop.f32.mrb[27].mxu0  ;;  %1192 = vmatpush1.bf16.msra.mxu1 %v1167_v48  ;;  %v1161_v59 = vmax.f32 %v1149_v52, 0.0 }
 0x4b4   : > { %v1155_v58 = vadd.f32 %v1154_v57, %v1086_v53  ;;  %v1162_v61 = vmax.f32 %v1151_v54, 0.0 }
 0x4b5   : > { %v1163_v60 = vmax.f32 %v1153_v56, 0.0 }
 0x4b6   : > { %v1164_v62 = vmax.f32 %v1155_v58, 0.0 }
 0x4b7   : > { %v1169_v63 = vpack.c.bf16 %v1163_v60, %v1161_v59 }
 0x4b8   : > { %v1170_v0 = vpack.c.bf16 %v1164_v62, %v1162_v61 }
 0x4ba   : > { %1193 = vmatprep.subr.bf16.mxu1 %v1170_v0 }
 0x4bb   : > { %1194 = vmatpush1.bf16.msra.mxu1 %v1169_v63 }
 0x4be   : > { %1389 = vmatmul.mubr.msk.bf16.vlgmr.msra.gmra.mrb[24].mxu1 %vm764_vm5, %v1418_v2 }
 0x591   : > { %v1225_v4 = vpop.f32.mrb[24].mxu1 }
 0x592   : > { %v1226_v5 = vadd.f32 %v1225_v4, %v1176_v3  ;;  %v1227_v6 = vpop.f32.mrb[25].mxu1 }
 0x593   : > { %v1228_v8 = vadd.f32 %v1227_v6, %v1176_v3  ;;  %v1229_v9 = vpop.f32.mrb[26].mxu1 }
 0x594   : > { %v1230_v10 = vadd.f32 %v1229_v9, %v1181_v7  ;;  %v1231_v11 = vpop.f32.mrb[27].mxu1  ;;  %v1234_v13 = vmax.f32 %v1226_v5, 0.0 }
 0x595   : > { %v1232_v12 = vadd.f32 %v1231_v11, %v1181_v7  ;;  %v1235_v15 = vmax.f32 %v1228_v8, 0.0 }
 0x596   : > { %v1236_v14 = vmax.f32 %v1230_v10, 0.0 }
 0x597   : > { %v1237_v16 = vmax.f32 %v1232_v12, 0.0 }
 0x598   : > { %v1239_v17 = vpack.c.bf16 %v1236_v14, %v1234_v13 }
 0x599   : > { %v1240_v18 = vpack.c.bf16 %v1237_v16, %v1235_v15 }
 0x59b   : > { %1251 = vmatprep.subr.bf16.mxu0 %v1240_v18 }
 0x59c   : > { %1252 = vmatpush1.bf16.msra.mxu0 %v1239_v17 }
 0x59f   : > { %1390 = vmatmul.mubr.msk.bf16.vlgmr.msra.gmra.mrb[28].mxu0 %vm1247_vm7, %v1238_v19 }
 0x672   : > { %v1285_v21 = vpop.f32.mrb[28].mxu0 }
 0x673   : > { %v1286_v22 = vadd.f32 %v1285_v21, %v1245_v20  ;;  %v1287_v23 = vpop.f32.mrb[29].mxu0 }
 0x674   : > { %v1288_v24 = vadd.f32 %v1287_v23, %v1245_v20  ;;  %v1289_v25 = vpop.f32.mrb[30].mxu0 }
 0x675   : > { %v1290_v26 = vpop.f32.mrb[31].mxu0 }
 0x676   : > { %v1294_v27 = vcombine.low %v1286_v22, %v1288_v24 }
 0x678   : > { %1296 = vst [vmem:[%s496_s29] sm:$0xff] %v1294_v27 }
 0x679 PF: > { %s25_s18 = sadd.s32 1, %s1425_s18  }
 0x67a   : > { %p22_p4 = scmp.ge.s32.totalorder %s25_s18, 4  }
 0x67c   :  { %24 = sbr.rel (!%p22_p4) target bundleno = 1 (0x1), region = 110 }

</bundles_post_ra>
